<compile_context>
chip_gen: v7x
topology: tpu7x:2x2x1
jax: 0.10.0
libtpu: 0.0.40
codegen_flags: <defaults>
</compile_context>

<pallas_src>
import jax
import jax.numpy as jnp
from jax.experimental import pallas as pl
from jax.experimental.pallas import tpu as pltpu


def _identity_kernel(x_ref, o_ref):
    # Whole-tile load + store (pure VMEM pass-through; the work is the DMAs).
    o_ref[...] = x_ref[...]


_LANE = 128
# Lane-dense widths to try (widest first); all are multiples of 128.
_WIDTH_CANDIDATES = (4096, 2048, 1024, 512, 256, 128)


def _device_kind() -> str:
    try:
        return jax.devices()[0].device_kind.lower()
    except Exception:  # pragma: no cover - be robust on exotic backends
        return ""


def _target_block_bytes() -> int:
    """Per-generation block size (double-buffered in+out must fit scoped VMEM)."""
    kind = _device_kind()
    if "v5" in kind:
        # 2 MiB x 2 buffers x (in + out) = 8 MiB < 16 MiB scoped default.
        return 2 * 1024 * 1024
    if ("v6" in kind) or ("v7" in kind):
        # 4 MiB x 2 buffers x (in + out) = 16 MiB < 32 MiB scoped default.
        return 4 * 1024 * 1024
    return 2 * 1024 * 1024  # conservative default for unknown chips


def _dimension_semantics():
    kind = _device_kind()
    # CORE_PARALLEL actually shards the grid across v7x's two TensorCores;
    # neutral-to-harmful to request it on single-TC v5e/v6e, so gate on chip.
    if "v7" in kind and hasattr(pltpu, "CORE_PARALLEL"):
        return (pltpu.CORE_PARALLEL,)
    return ("parallel",)


def _min_sublanes(itemsize: int) -> int:
    # Packed-row granularity: 8 rows for 4-byte dtypes, 16 for 2-byte, 32 for 1-byte.
    return max(8, 32 // max(1, itemsize))


def _tiled_identity_copy(flat):
    """Lane-dense tiled HBM copy. `flat` is 1-D with length % 128 == 0, > 0."""
    n = flat.shape[0]
    itemsize = jnp.dtype(flat.dtype).itemsize

    # Widest lane-dense width that evenly divides the element count.
    width = _LANE
    for cand in _WIDTH_CANDIDATES:
        if n % cand == 0:
            width = cand
            break
    rows = n // width
    slab = flat.reshape(rows, width)  # contiguous reshape: no data movement

    # Block rows sized for the per-generation target; multiple of the packed
    # sublane granularity (or the full row extent, which is always legal).
    block_rows = max(1, _target_block_bytes() // (width * itemsize))
    if block_rows >= rows:
        block_rows = rows  # single block along rows (== full array dim)
    else:
        sub = _min_sublanes(itemsize)
        block_rows = max(sub, (block_rows // sub) * sub)
        block_rows = min(block_rows, rows)

    grid = (pl.cdiv(rows, block_rows),)  # partial last block is masked by Pallas

    out = pl.pallas_call(
        _identity_kernel,
        out_shape=jax.ShapeDtypeStruct((rows, width), slab.dtype),
        grid=grid,
        in_specs=[pl.BlockSpec((block_rows, width), lambda i: (i, 0))],
        out_specs=pl.BlockSpec((block_rows, width), lambda i: (i, 0)),
        compiler_params=pltpu.CompilerParams(
            dimension_semantics=_dimension_semantics(),
        ),
        cost_estimate=pl.CostEstimate(
            flops=0,
            transcendentals=0,
            bytes_accessed=2 * n * itemsize,  # read + write
        ),
    )(slab)

    return out.reshape(n)


def limitnet_forward(x):
    """Identity forward of LimitNet routed through a Pallas TPU copy kernel."""
    orig_shape = x.shape
    n = x.size
    if n == 0:
        return x

    flat = x.reshape(-1)
    n_main = (n // _LANE) * _LANE

    if n_main == n:
        # Common case: element count is lane-aligned -> fully tiled copy.
        return _tiled_identity_copy(flat).reshape(orig_shape)

    if n_main == 0:
        # Fewer than 128 elements: nothing lane-aligned to tile; the identity
        # is exact without touching the kernel.
        return x

    # Rare fallback: tile the 128-aligned prefix, handle the <=127-element
    # tail outside the kernel (never a whole-array VMEM block).
    main = _tiled_identity_copy(flat[:n_main])
    tail = flat[n_main:]
    return jnp.concatenate([main, tail], axis=0).reshape(orig_shape)


# Jitted entry point: avoids eager dispatch of the reshapes + custom call,
# which matters when the kernel itself is only a few microseconds.
limitnet_forward_jit = jax.jit(limitnet_forward)


if __name__ == "__main__":
    key = jax.random.PRNGKey(0)
    # NCHW input consistent with a conv-style model: batch=2, channels=4, 16x16 spatial.
    x = jax.random.normal(key, (2, 4, 16, 16), dtype=jnp.float32)

    y = limitnet_forward_jit(x)
    y = jax.block_until_ready(y)

    # Forward is identity -> output must equal input exactly.
    assert y.shape == x.shape, (y.shape, x.shape)
    assert y.dtype == x.dtype, (y.dtype, x.dtype)
    assert bool(jnp.all(y == x)), "identity forward mismatch"

    print("KERNEL_OK")
</pallas_src>

<mosaic_0001>
module attributes {stable_mosaic.version = 11 : i64} {
  func.func @_identity_kernel(%arg0: i32, %arg1: memref<1x2048xf32, #tpu.memory_space<vmem>>, %arg2: memref<1x2048xf32, #tpu.memory_space<vmem>>) attributes {dimension_semantics = [#tpu.dimension_semantics<parallel>], iteration_bounds = array<i64: 1>, scalar_prefetch = 0 : i64, scratch_operands = 0 : i64, tpu.core_type = #tpu.core_type<tc>, window_params = [{transform_indices = @transform_0, window_bounds = array<i64: 1, 2048>}, {transform_indices = @transform_1, window_bounds = array<i64: 1, 2048>}]} {
    %c0 = arith.constant 0 : index
    %c0_0 = arith.constant 0 : index
    %0 = vector.load %arg1[%c0, %c0_0] : memref<1x2048xf32, #tpu.memory_space<vmem>>, vector<1x2048xf32>
    %c0_1 = arith.constant 0 : index
    %c0_2 = arith.constant 0 : index
    %1 = vector.load %arg2[%c0_1, %c0_2] : memref<1x2048xf32, #tpu.memory_space<vmem>>, vector<1x2048xf32>
    tpu.vector_store %arg2[%c0_1, %c0_2], %0 {strides = array<i32>} : memref<1x2048xf32, #tpu.memory_space<vmem>>, vector<1x2048xf32>,
    return
  }
  func.func @transform_0(%arg0: i32) -> (i32, i32) {
    %c0_i32 = arith.constant 0 : i32
    %c0_i32_0 = arith.constant 0 : i32
    return %arg0, %c0_i32 : i32, i32
  }
  func.func @transform_1(%arg0: i32) -> (i32, i32) {
    %c0_i32 = arith.constant 0 : i32
    %c0_i32_0 = arith.constant 0 : i32
    return %arg0, %c0_i32 : i32, i32
  }
}

</mosaic_0001>

<bundles_post_ra>
// kernel: limitnet_forward.1
= control target key start
LH: loop header
LB: loop body
LE: loop exit
PB: predicated region body
PF: predicated region fallthrough
CT: control target
= control target key end

     0   :  { %s38_s0 = inlined_call_operand.vmem [shape: f32[1,2048], index: 0, kind: input, shape index: {}]   ;;  %s39_s1 = inlined_call_operand.vmem [shape: f32[1,2048], index: 1, kind: output, shape index: {}]  }
   0x1   :  { %v8_v0 = vld [vmem:[%s38_s0] sm:$0xff]  ;;  %v9_v1 = vld [vmem:[%s38_s0 + $0x8] sm:$0xff] }
   0x2   :  { %10 = vst [vmem:[%s39_s1] sm:$0xff] %v8_v0  ;;  %11 = vst [vmem:[%s39_s1 + $0x8] sm:$0xff] %v9_v1 }

</bundles_post_ra>
